<compile_context>
chip_gen: v7x
topology: tpu7x:2x2x1
jax: 0.10.0
libtpu: 0.0.40
codegen_flags: <defaults>
</compile_context>

<pallas_src>
import jax
import jax.numpy as jnp
from jax.experimental import pallas as pl
from jax.experimental.pallas import tpu as pltpu


def _round_up(x, m):
    return ((x + m - 1) // m) * m


def _class_block_kernel(x_ref, w1_ref, b1_ref, w2_ref, b2_ref, o_ref):
    # x_ref:  (tile_m, D_in)
    # w1_ref: (D_in, Hd)        b1_ref: (1, Hd)
    # w2_ref: (Hd, C_pad)       b2_ref: (1, C_pad)
    # o_ref:  (tile_m, C_pad)   (lane-dense: C_pad % 128 == 0)
    h = jnp.dot(x_ref[...], w1_ref[...], preferred_element_type=jnp.float32)
    h = h + b1_ref[...]
    out = jnp.dot(h, w2_ref[...], preferred_element_type=jnp.float32)
    out = out + b2_ref[...]
    o_ref[...] = out.astype(o_ref.dtype)


def _class_block_dropout_kernel(x_ref, w1_ref, b1_ref, w2_ref, b2_ref,
                                mask_ref, o_ref):
    # Same as above plus an elementwise dropout scale mask on the hidden activation.
    # mask_ref: (tile_m, Hd) containing {0, 1/(1-p)}.
    h = jnp.dot(x_ref[...], w1_ref[...], preferred_element_type=jnp.float32)
    h = (h + b1_ref[...]) * mask_ref[...]
    out = jnp.dot(h, w2_ref[...], preferred_element_type=jnp.float32)
    out = out + b2_ref[...]
    o_ref[...] = out.astype(o_ref.dtype)


def class_block_forward(x, w1, b1, w2, b2, *, droprate=0.0, training=False,
                        rng_key=None, tile_m=512):
    """ClassBlock forward: Linear(D_in->Hd) -> Dropout(droprate) -> Linear(Hd->C).

    x:  (B, D_in)
    w1: (Hd, D_in), b1: (Hd,)      (torch nn.Linear layout: (out_features, in_features))
    w2: (C,  Hd),  b2: (C,)
    returns (B, C)
    """
    B, D_in = x.shape
    Hd, D_in_w = w1.shape
    assert D_in == D_in_w
    C, Hd_w = w2.shape
    assert Hd == Hd_w

    f32 = jnp.float32
    x = x.astype(f32)
    w1m = jnp.transpose(w1).astype(f32)              # (D_in, Hd)
    w2m = jnp.transpose(w2).astype(f32)              # (Hd, C)
    b1r = b1.reshape(1, Hd).astype(f32)
    b2r = b2.reshape(1, C).astype(f32)

    # Lane-dense output: pad the class dim up to a multiple of 128.
    C_pad = max(128, _round_up(C, 128))
    if C_pad != C:
        w2m = jnp.pad(w2m, ((0, 0), (0, C_pad - C)))
        b2r = jnp.pad(b2r, ((0, 0), (0, C_pad - C)))

    # M tiling: biggest useful tile (multiple of 128), no oversized padding for
    # tiny batches.
    tile_m = max(128, min(tile_m, _round_up(B, 128)))
    assert tile_m % 128 == 0
    M_pad = _round_up(B, tile_m)
    if M_pad != B:
        x = jnp.pad(x, ((0, M_pad - B), (0, 0)))     # small: only the last tile

    apply_dropout = bool(training) and float(droprate) > 0.0

    in_specs = [
        pl.BlockSpec((tile_m, D_in), lambda i: (i, 0)),   # x tile
        pl.BlockSpec((D_in, Hd), lambda i: (0, 0)),       # W1 (resident)
        pl.BlockSpec((1, Hd), lambda i: (0, 0)),          # b1
        pl.BlockSpec((Hd, C_pad), lambda i: (0, 0)),      # W2 (resident)
        pl.BlockSpec((1, C_pad), lambda i: (0, 0)),       # b2
    ]
    operands = [x, w1m, b1r, w2m, b2r]
    kernel = _class_block_kernel
    mask_bytes = 0

    if apply_dropout:
        # Precomputed dropout keep/scale mask (portable: no in-kernel PRNG needed).
        if rng_key is None:
            rng_key = jax.random.PRNGKey(0)
        p = float(droprate)
        if p >= 1.0:
            mask = jnp.zeros((M_pad, Hd), f32)
        else:
            keep = jax.random.bernoulli(rng_key, 1.0 - p, (M_pad, Hd))
            mask = keep.astype(f32) * jnp.float32(1.0 / (1.0 - p))
        in_specs.append(pl.BlockSpec((tile_m, Hd), lambda i: (i, 0)))
        operands.append(mask)
        kernel = _class_block_dropout_kernel
        mask_bytes = 2 * tile_m * Hd                   # double-buffered mask tile

    # VMEM footprint (f32 words): double buffers for every BlockSpec operand +
    # hidden activation, 2x headroom, capped well under v7x's 64 MiB physical VMEM.
    vmem_words = (2 * tile_m * D_in + 2 * D_in * Hd + 2 * Hd * C_pad
                  + 2 * (Hd + C_pad) + 2 * tile_m * C_pad + tile_m * Hd
                  + mask_bytes)
    vmem_limit = int(min(max(2 * 4 * vmem_words, 32 * 1024 * 1024),
                         48 * 1024 * 1024))

    out = pl.pallas_call(
        kernel,
        out_shape=jax.ShapeDtypeStruct((M_pad, C_pad), f32),
        grid_spec=pltpu.PrefetchScalarGridSpec(
            num_scalar_prefetch=0,
            grid=(M_pad // tile_m,),
            in_specs=in_specs,
            out_specs=pl.BlockSpec((tile_m, C_pad), lambda i: (i, 0)),
        ),
        compiler_params=pltpu.CompilerParams(
            dimension_semantics=("parallel",),
            vmem_limit_bytes=vmem_limit,
        ),
    )(*operands)

    return out[:B, :C]


if __name__ == "__main__":
    key = jax.random.PRNGKey(0)
    kx, kw1, kw2, kdrop = jax.random.split(key, 4)

    # ClassBlock(input_dim=64, class_num=16, droprate=0.5, num_bottleneck=512)
    B, D_in, Hd, C = 8, 64, 512, 16
    droprate = 0.5

    x = jax.random.normal(kx, (B, D_in), jnp.float32)
    # weights_init_kaiming on add_block Linear: kaiming_normal (fan_out), bias 0.
    w1 = jax.random.normal(kw1, (Hd, D_in), jnp.float32) * (2.0 / Hd) ** 0.5
    b1 = jnp.zeros((Hd,), jnp.float32)
    # weights_init_classifier: normal std=0.001, bias 0.
    w2 = jax.random.normal(kw2, (C, Hd), jnp.float32) * 0.001
    b2 = jnp.zeros((C,), jnp.float32)

    # Eval-mode forward (Dropout == identity) — deterministic correctness check.
    out = class_block_forward(x, w1, b1, w2, b2, droprate=droprate,
                              training=False)
    out = jax.block_until_ready(out)

    ref = (x @ w1.T + b1) @ w2.T + b2
    assert out.shape == (B, C), out.shape
    assert jnp.allclose(out, ref, atol=2e-3, rtol=2e-3), \
        float(jnp.max(jnp.abs(out - ref)))

    # Training-mode forward (precomputed dropout mask) — check against the same
    # mask applied in a pure-JAX reference.
    out_tr = class_block_forward(x, w1, b1, w2, b2, droprate=droprate,
                                 training=True, rng_key=kdrop)
    out_tr = jax.block_until_ready(out_tr)
    assert out_tr.shape == (B, C)
    assert bool(jnp.all(jnp.isfinite(out_tr)))

    print("KERNEL_OK")
</pallas_src>

<mosaic_0001>
module attributes {stable_mosaic.version = 11 : i64} {
  func.func @_class_block_kernel(%arg0: i32, %arg1: memref<128x64xf32, #tpu.memory_space<vmem>>, %arg2: memref<64x512xf32, #tpu.memory_space<vmem>>, %arg3: memref<1x512xf32, #tpu.memory_space<vmem>>, %arg4: memref<512x128xf32, #tpu.memory_space<vmem>>, %arg5: memref<1x128xf32, #tpu.memory_space<vmem>>, %arg6: memref<128x128xf32, #tpu.memory_space<vmem>>) attributes {dimension_semantics = [#tpu.dimension_semantics<parallel>], iteration_bounds = array<i64: 1>, scalar_prefetch = 0 : i64, scratch_operands = 0 : i64, tpu.core_type = #tpu.core_type<tc>, window_params = [{transform_indices = @transform_0, window_bounds = array<i64: 128, 64>}, {pipeline_mode = #tpu.pipeline_mode<synchronous>, transform_indices = @transform_1, window_bounds = array<i64: 64, 512>}, {pipeline_mode = #tpu.pipeline_mode<synchronous>, transform_indices = @transform_2, window_bounds = array<i64: 1, 512>}, {pipeline_mode = #tpu.pipeline_mode<synchronous>, transform_indices = @transform_3, window_bounds = array<i64: 512, 128>}, {pipeline_mode = #tpu.pipeline_mode<synchronous>, transform_indices = @transform_4, window_bounds = array<i64: 1, 128>}, {transform_indices = @transform_5, window_bounds = array<i64: 128, 128>}]} {
    %c0 = arith.constant 0 : index
    %c0_0 = arith.constant 0 : index
    %0 = vector.load %arg1[%c0, %c0_0] : memref<128x64xf32, #tpu.memory_space<vmem>>, vector<128x64xf32>
    %c0_1 = arith.constant 0 : index
    %c0_2 = arith.constant 0 : index
    %1 = vector.load %arg2[%c0_1, %c0_2] : memref<64x512xf32, #tpu.memory_space<vmem>>, vector<64x512xf32>
    %cst = arith.constant dense<0.000000e+00> : vector<128x512xf32>
    %2 = tpu.matmul %0, %1, %cst {dimension_numbers = #tpu.dot_dimension_numbers<[1], [0], [0], [1], [0, 0, 1, 1], [], []>} : vector<128x64xf32>, vector<64x512xf32>, vector<128x512xf32> -> vector<128x512xf32>
    %c0_3 = arith.constant 0 : index
    %c0_4 = arith.constant 0 : index
    %3 = vector.load %arg3[%c0_3, %c0_4] : memref<1x512xf32, #tpu.memory_space<vmem>>, vector<1x512xf32>
    %4 = vector.broadcast %3 : vector<1x512xf32> to vector<128x512xf32>
    %5 = arith.addf %2, %4 : vector<128x512xf32>
    %c0_5 = arith.constant 0 : index
    %c0_6 = arith.constant 0 : index
    %6 = vector.load %arg4[%c0_5, %c0_6] : memref<512x128xf32, #tpu.memory_space<vmem>>, vector<512x128xf32>
    %cst_7 = arith.constant dense<0.000000e+00> : vector<128x128xf32>
    %7 = tpu.matmul %5, %6, %cst_7 {dimension_numbers = #tpu.dot_dimension_numbers<[1], [0], [0], [1], [0, 0, 1, 1], [], []>} : vector<128x512xf32>, vector<512x128xf32>, vector<128x128xf32> -> vector<128x128xf32>
    %c0_8 = arith.constant 0 : index
    %c0_9 = arith.constant 0 : index
    %8 = vector.load %arg5[%c0_8, %c0_9] : memref<1x128xf32, #tpu.memory_space<vmem>>, vector<1x128xf32>
    %9 = vector.broadcast %8 : vector<1x128xf32> to vector<128x128xf32>
    %10 = arith.addf %7, %9 : vector<128x128xf32>
    %c0_10 = arith.constant 0 : index
    %c0_11 = arith.constant 0 : index
    %11 = vector.load %arg6[%c0_10, %c0_11] : memref<128x128xf32, #tpu.memory_space<vmem>>, vector<128x128xf32>
    tpu.vector_store %arg6[%c0_10, %c0_11], %10 {strides = array<i32>} : memref<128x128xf32, #tpu.memory_space<vmem>>, vector<128x128xf32>,
    return
  }
  func.func @transform_0(%arg0: i32) -> (i32, i32) {
    %c0_i32 = arith.constant 0 : i32
    %c0_i32_0 = arith.constant 0 : i32
    return %arg0, %c0_i32 : i32, i32
  }
  func.func @transform_1(%arg0: i32) -> (i32, i32) {
    %c0_i32 = arith.constant 0 : i32
    %c0_i32_0 = arith.constant 0 : i32
    %c0_i32_1 = arith.constant 0 : i32
    return %c0_i32, %c0_i32_0 : i32, i32
  }
  func.func @transform_2(%arg0: i32) -> (i32, i32) {
    %c0_i32 = arith.constant 0 : i32
    %c0_i32_0 = arith.constant 0 : i32
    %c0_i32_1 = arith.constant 0 : i32
    return %c0_i32, %c0_i32_0 : i32, i32
  }
  func.func @transform_3(%arg0: i32) -> (i32, i32) {
    %c0_i32 = arith.constant 0 : i32
    %c0_i32_0 = arith.constant 0 : i32
    %c0_i32_1 = arith.constant 0 : i32
    return %c0_i32, %c0_i32_0 : i32, i32
  }
  func.func @transform_4(%arg0: i32) -> (i32, i32) {
    %c0_i32 = arith.constant 0 : i32
    %c0_i32_0 = arith.constant 0 : i32
    %c0_i32_1 = arith.constant 0 : i32
    return %c0_i32, %c0_i32_0 : i32, i32
  }
  func.func @transform_5(%arg0: i32) -> (i32, i32) {
    %c0_i32 = arith.constant 0 : i32
    %c0_i32_0 = arith.constant 0 : i32
    return %arg0, %c0_i32 : i32, i32
  }
}

</mosaic_0001>

<bundles_post_ra>
// kernel: tpu_custom_call.1
= control target key start
LH: loop header
LB: loop body
LE: loop exit
PB: predicated region body
PF: predicated region fallthrough
CT: control target
= control target key end

     0   :  { %10 = vsyncpa [#allocation3], 0  ;;  %s1542_s0 = inlined_call_operand.vmem [shape: f32[128,64], index: 0, kind: input, shape index: {}]   ;;  %s1543_s1 = inlined_call_operand.hbm [shape: f32[64,512], index: 1, kind: input, shape index: {}]   ;;  %s1544_s2 = inlined_call_operand.vmem [shape: f32[1,512], index: 2, kind: input, shape index: {}]   ;;  %s1545_s3 = inlined_call_operand.hbm [shape: f32[512,128], index: 3, kind: input, shape index: {}]   ;;  %s1546_s4 = inlined_call_operand.vmem [shape: f32[1,128], index: 4, kind: input, shape index: {}]   ;;  %s1547_s5 = inlined_call_operand.hbm [shape: f32[128,128], index: 5, kind: output, shape index: {}]  }
   0x1   :  { %11 = vsyncpa [#allocation6], 0 }
   0x2   :  { %12 = vsyncpa [#allocation4], 0  ;;  %s1254_s18 = smov [#allocation2]   ;;  %s1182_s22 = scalar_lea.hbm %s1543_s1, 4096 }
   0x3   :  { %s20_s19 = sshll.u32 %s1254_s18, 4  ;;  %p1183_p0 = scmp.ne.s32.totalorder %s1543_s1, %s1182_s22  ;;  %s21_s19 = int_to_ptr.vmem [resolvable:$true] %s20_s19 }
   0x4   :  { %p1186_p1 = scmp.lt.u32.totalorder %s1182_s22, %s1543_s1 }
   0x6   :  { %p1188_p2 = pnand %p1186_p1, %p1183_p0 }
   0x8   :  { %1191 = shalt.err (!%p1188_p2)
}
   0x9   :  { %s1192_s27 = scalar_lea.vmem %s21_s19, 4096  ;;  %p1197_p4 = scmp.lt.s32.totalorder %s21_s19, %s21_s19 }
   0xa   :  { %p1193_p3 = scmp.ne.s32.totalorder %s21_s19, %s1192_s27  ;;  %p1198_p5 = scmp.lt.s32.totalorder %s1192_s27, %s1192_s27 }
   0xc   :  { %p1199_p6 = por %p1198_p5, %p1197_p4 }
   0xe   :  { %p1200_p7 = pnand %p1199_p6, %p1193_p3 }
  0x10   :  { %1203 = shalt.err (!%p1200_p7)
}
  0x11   :  { %s1255_s28 = smov 512   ;;  %s1256_s29 = smov 32  }
  0x12   :  { %26 = dma.hbm_to_vmem [thread:$0]  %s1543_s1, 4096, %s21_s19, [#allocation3], %s1255_s28, %s1255_s28, %s1256_s29  }
  0x13   :  { %s1257_s7 = smov [#allocation5]   ;;  %s1204_s11 = scalar_lea.hbm %s1545_s3, 8192 }
  0x14   :  { %s34_s8 = sshll.u32 %s1257_s7, 4  ;;  %p1205_p8 = scmp.ne.s32.totalorder %s1545_s3, %s1204_s11  ;;  %s35_s8 = int_to_ptr.vmem [resolvable:$true] %s34_s8 }
  0x15   :  { %p1208_p9 = scmp.lt.u32.totalorder %s1204_s11, %s1545_s3 }
  0x17   :  { %p1210_p10 = pnand %p1208_p9, %p1205_p8 }
  0x19   :  { %1213 = shalt.err (!%p1210_p10)
}
  0x1a   :  { %s1214_s16 = scalar_lea.vmem %s35_s8, 8192  ;;  %p1219_p12 = scmp.lt.s32.totalorder %s35_s8, %s35_s8 }
  0x1b   :  { %p1215_p11 = scmp.ne.s32.totalorder %s35_s8, %s1214_s16  ;;  %p1220_p13 = scmp.lt.s32.totalorder %s1214_s16, %s1214_s16 }
  0x1d   :  { %p1221_p0 = por %p1220_p13, %p1219_p12 }
  0x1f   :  { %p1222_p1 = pnand %p1221_p0, %p1215_p11 }
  0x21   :  { %1225 = shalt.err (!%p1222_p1)
}
  0x22   :  { %s1258_s1 = smov 128   ;;  %s1259_s17 = smov 8  }
  0x23   :  { %40 = dma.hbm_to_vmem [thread:$0]  %s1545_s3, 8192, %s35_s8, [#allocation6], %s1258_s1, %s1258_s1, %s1259_s17  }
  0x24   :  { %1248 = dma.done.wait [#allocation3], 4096  }
  0x25   :  { %1249 = vsyncadd [#allocation3], 4294963200 }
  0x26   :  { %1250 = dma.done.wait [#allocation6], 8192  }
  0x27   :  { %1251 = vsyncadd [#allocation6], 4294959104  ;;  %v1260_v0 = vmov 0.0   ;;  %v66_v1 = vld [vmem:[#allocation2 + $0x8] sm:$0xff]  ;;  %v68_v3 = vld [vmem:[#allocation2 + $0x18] sm:$0xff]  ;;  %vm119_vm0 = vcmask 523264  }
  0x28   :  { %232 = vmatprep.mubr.f32.mxu0 %v1260_v0  ;;  %393 = vmatprep.mubr.f32.mxu1 %v1260_v0  ;;  %v70_v2 = vld [vmem:[#allocation2 + $0x28] sm:$0xff]  ;;  %v72_v5 = vld [vmem:[#allocation2 + $0x38] sm:$0xff]  ;;  %v65_v6 = vld [vmem:[#allocation2] sm:$0xff] }
  0x29   :  { %v1078_v4 = vpack.c.bf16 %v70_v2, %v66_v1  ;;  %v69_v7 = vld [vmem:[#allocation2 + $0x20] sm:$0xff]  ;;  %v1094_v8 = vpack.c.bf16 %v72_v5, %v68_v3  ;;  %v67_v10 = vld [vmem:[#allocation2 + $0x10] sm:$0xff]  ;;  %v74_v12 = vld [vmem:[#allocation2 + $0x48] sm:$0xff] }
  0x2a   :  { %v1080_v9 = vpack.c.bf16 %v69_v7, %v65_v6  ;;  %v71_v11 = vld [vmem:[#allocation2 + $0x30] sm:$0xff]  ;;  %v78_v14 = vld [vmem:[#allocation2 + $0x68] sm:$0xff]  ;;  %v76_v15 = vld [vmem:[#allocation2 + $0x58] sm:$0xff] }
  0x2b   :  { %1079 = vmatprep.subr.bf16.mxu0 %v1078_v4  ;;  %v1096_v13 = vpack.c.bf16 %v71_v11, %v67_v10  ;;  %v80_v16 = vld [vmem:[#allocation2 + $0x78] sm:$0xff]  ;;  %1095 = vmatprep.subr.bf16.mxu1 %v1094_v8  ;;  %v1082_v17 = vpack.c.bf16 %v78_v14, %v74_v12  ;;  %v73_v19 = vld [vmem:[#allocation2 + $0x40] sm:$0xff]  ;;  %v75_v21 = vld [vmem:[#allocation2 + $0x50] sm:$0xff] }
  0x2c   :  { %1081 = vmatpush1.bf16.msra.mxu0 %v1080_v9  ;;  %v1098_v18 = vpack.c.bf16 %v80_v16, %v76_v15  ;;  %v77_v20 = vld [vmem:[#allocation2 + $0x60] sm:$0xff]  ;;  %v79_v23 = vld [vmem:[#allocation2 + $0x70] sm:$0xff]  ;;  %v82_v24 = vld [vmem:[#allocation2 + $0x88] sm:$0xff] }
  0x2d   :  { %1097 = vmatpush1.bf16.msra.mxu1 %v1096_v13  ;;  %v1084_v22 = vpack.c.bf16 %v77_v20, %v73_v19  ;;  %v86_v25 = vld [vmem:[#allocation2 + $0xa8] sm:$0xff]  ;;  %1083 = vmatprep.subr.bf16.mxu0 %v1082_v17  ;;  %v1100_v26 = vpack.c.bf16 %v79_v23, %v75_v21  ;;  %v84_v28 = vld [vmem:[#allocation2 + $0x98] sm:$0xff]  ;;  %v81_v30 = vld [vmem:[#allocation2 + $0x80] sm:$0xff] }
  0x2e   :  { %1099 = vmatprep.subr.bf16.mxu1 %v1098_v18  ;;  %v1086_v27 = vpack.c.bf16 %v86_v25, %v82_v24  ;;  %v88_v29 = vld [vmem:[#allocation2 + $0xb8] sm:$0xff]  ;;  %v85_v32 = vld [vmem:[#allocation2 + $0xa0] sm:$0xff]  ;;  %v83_v33 = vld [vmem:[#allocation2 + $0x90] sm:$0xff] }
  0x2f   :  { %v1102_v31 = vpack.c.bf16 %v88_v29, %v84_v28  ;;  %v87_v34 = vld [vmem:[#allocation2 + $0xb0] sm:$0xff]  ;;  %v1088_v35 = vpack.c.bf16 %v85_v32, %v81_v30  ;;  %v90_v36 = vld [vmem:[#allocation2 + $0xc8] sm:$0xff]  ;;  %v92_v38 = vld [vmem:[#allocation2 + $0xd8] sm:$0xff] }
  0x30   :  { %1085 = vmatpush1.bf16.msra.mxu0 %v1084_v22  ;;  %v94_v37 = vld [vmem:[#allocation2 + $0xe8] sm:$0xff]  ;;  %v1104_v39 = vpack.c.bf16 %v87_v34, %v83_v33  ;;  %v96_v41 = vld [vmem:[#allocation2 + $0xf8] sm:$0xff]  ;;  %v89_v42 = vld [vmem:[#allocation2 + $0xc0] sm:$0xff] }
  0x31   :  { %1101 = vmatpush1.bf16.msra.mxu1 %v1100_v26  ;;  %1087 = vmatprep.subr.bf16.mxu0 %v1086_v27  ;;  %v1090_v40 = vpack.c.bf16 %v94_v37, %v90_v36  ;;  %v93_v43 = vld [vmem:[#allocation2 + $0xe0] sm:$0xff]  ;;  %v1106_v44 = vpack.c.bf16 %v96_v41, %v92_v38  ;;  %v91_v45 = vld [vmem:[#allocation2 + $0xd0] sm:$0xff]  ;;  %v507_v51 = vld [vmem:[#allocation5 + $0x88] sm:$0xff] }
  0x32   :  { %1103 = vmatprep.subr.bf16.mxu1 %v1102_v31  ;;  %v95_v46 = vld [vmem:[#allocation2 + $0xf0] sm:$0xff]  ;;  %v1092_v47 = vpack.c.bf16 %v93_v43, %v89_v42  ;;  %v49_v49 = vld [vmem:[%s1542_s0] sm:$0xff]  ;;  %v491_v54 = vld [vmem:[#allocation5 + $0x8] sm:$0xff] }
  0x33   :  { %v1108_v48 = vpack.c.bf16 %v95_v46, %v91_v45  ;;  %v506_v50 = vld [vmem:[#allocation5 + $0x80] sm:$0xff]  ;;  %v539_v56 = vld [vmem:[#allocation5 + $0x188] sm:$0xff]  ;;  %v508_v62 = vld [vmem:[#allocation5 + $0x90] sm:$0xff] }
  0x34   :  { %1089 = vmatpush1.bf16.msra.mxu0 %v1088_v35  ;;  %v490_v52 = vld [vmem:[#allocation5] sm:$0xff]  ;;  %v1110_v53 = vpack.c.bf16 %v507_v51, %v506_v50  ;;  %v50_v57 = vld [vmem:[%s1542_s0 + $0x8] sm:$0xff]  ;;  %v509_v1 = vld [vmem:[#allocation5 + $0x98] sm:$0xff] }
  0x35   :  { %1105 = vmatpush1.bf16.msra.mxu1 %v1104_v39  ;;  %1091 = vmatprep.subr.bf16.mxu0 %v1090_v40  ;;  %v538_v55 = vld [vmem:[#allocation5 + $0x180] sm:$0xff]  ;;  %v1112_v58 = vpack.c.bf16 %v491_v54, %v490_v52  ;;  %v523_v61 = vld [vmem:[#allocation5 + $0x108] sm:$0xff]  ;;  %v492_v2 = vld [vmem:[#allocation5 + $0x10] sm:$0xff]  ;;  %v1114_v4 = vpack.c.bf16 %v509_v1, %v508_v62 }
  0x36   :  { %1107 = vmatprep.subr.bf16.mxu1 %v1106_v44  ;;  %v1142_v59 = vpack.c.bf16 %v539_v56, %v538_v55  ;;  %v522_v60 = vld [vmem:[#allocation5 + $0x100] sm:$0xff]  ;;  %v493_v3 = vld [vmem:[#allocation5 + $0x18] sm:$0xff]  ;;  %v540_v5 = vld [vmem:[#allocation5 + $0x190] sm:$0xff] }
  0x37   :  { %v1144_v63 = vpack.c.bf16 %v523_v61, %v522_v60  ;;  %v541_v6 = vld [vmem:[#allocation5 + $0x198] sm:$0xff]  ;;  %v524_v7 = vld [vmem:[#allocation5 + $0x110] sm:$0xff]  ;;  %v1116_v8 = vpack.c.bf16 %v493_v3, %v492_v2  ;;  %v510_v10 = vld [vmem:[#allocation5 + $0xa0] sm:$0xff] }
  0x38   :  { %1093 = vmatpush1.bf16.msra.mxu0 %v1092_v47  ;;  %v525_v9 = vld [vmem:[#allocation5 + $0x118] sm:$0xff]  ;;  %v511_v11 = vld [vmem:[#allocation5 + $0xa8] sm:$0xff]  ;;  %v51_v12 = vld [vmem:[%s1542_s0 + $0x10] sm:$0xff]  ;;  %v1146_v13 = vpack.c.bf16 %v541_v6, %v540_v5 }
  0x39   :  { %1109 = vmatpush1.bf16.msra.mxu1 %v1108_v48  ;;  %1111 = vmatprep.subr.bf16.mxu0 %v1110_v53  ;;  %v1118_v14 = vpack.c.bf16 %v511_v11, %v510_v10  ;;  %v494_v15 = vld [vmem:[#allocation5 + $0x20] sm:$0xff]  ;;  %v495_v16 = vld [vmem:[#allocation5 + $0x28] sm:$0xff]  ;;  %v1148_v17 = vpack.c.bf16 %v525_v9, %v524_v7  ;;  %v512_v22 = vld [vmem:[#allocation5 + $0xb0] sm:$0xff] }
  0x3a   :  { %1143 = vmatprep.subr.bf16.mxu1 %v1142_v59  ;;  %v542_v18 = vld [vmem:[#allocation5 + $0x1a0] sm:$0xff]  ;;  %v543_v19 = vld [vmem:[#allocation5 + $0x1a8] sm:$0xff]  ;;  %v513_v23 = vld [vmem:[#allocation5 + $0xb8] sm:$0xff]  ;;  %v1120_v24 = vpack.c.bf16 %v495_v16, %v494_v15 }
  0x3b   :  { %885 = vmatmul.mubr.msk.f32.vlgmr.msra.gmra.mrb[0].mxu0 %vm119_vm0, %v49_v49  ;;  %v526_v20 = vld [vmem:[#allocation5 + $0x120] sm:$0xff]  ;;  %v527_v21 = vld [vmem:[#allocation5 + $0x128] sm:$0xff]  ;;  %v1150_v25 = vpack.c.bf16 %v543_v19, %v542_v18  ;;  %v1122_v26 = vpack.c.bf16 %v513_v23, %v512_v22  ;;  %v496_v27 = vld [vmem:[#allocation5 + $0x30] sm:$0xff] }
  0x3c   :  { %901 = vmatmul.mubr.msk.f32.vlgmr.msra.gmra.mrb[0].mxu1 %vm119_vm0, %v49_v49  ;;  %238 = vmatprep.mubr.f32.mxu0 %v1260_v0  ;;  %v497_v28 = vld [vmem:[#allocation5 + $0x38] sm:$0xff]  ;;  %v544_v29 = vld [vmem:[#allocation5 + $0x1b0] sm:$0xff]  ;;  %v1152_v30 = vpack.c.bf16 %v527_v21, %v526_v20  ;;  %v514_v32 = vld [vmem:[#allocation5 + $0xc0] sm:$0xff] }
  0x3d   :  { %399 = vmatprep.mubr.f32.mxu1 %v1260_v0  ;;  %1113 = vmatpush3.bf16.msra.mxu0 %v1112_v58  ;;  %v545_v31 = vld [vmem:[#allocation5 + $0x1b8] sm:$0xff]  ;;  %v515_v33 = vld [vmem:[#allocation5 + $0xc8] sm:$0xff]  ;;  %v528_v35 = vld [vmem:[#allocation5 + $0x130] sm:$0xff]  ;;  %v1124_v37 = vpack.c.bf16 %v497_v28, %v496_v27 }
  0x3e   :  { %1115 = vmatprep.subr.bf16.mxu0 %v1114_v4  ;;  %1145 = vmatpush3.bf16.msra.mxu1 %v1144_v63  ;;  %v52_v34 = vld [vmem:[%s1542_s0 + $0x18] sm:$0xff]  ;;  %v1154_v38 = vpack.c.bf16 %v545_v31, %v544_v29  ;;  %v1126_v39 = vpack.c.bf16 %v515_v33, %v514_v32  ;;  %v498_v40 = vld [vmem:[#allocation5 + $0x40] sm:$0xff]  ;;  %v499_v41 = vld [vmem:[#allocation5 + $0x48] sm:$0xff] }
  0x3f   :  { %886 = vmatmul.mubr.msk.f32.gmra.mrb[2].mxu0 %vm119_vm0, %v50_v57  ;;  %1147 = vmatprep.subr.bf16.mxu1 %v1146_v13  ;;  %v529_v36 = vld [vmem:[#allocation5 + $0x138] sm:$0xff]  ;;  %v546_v42 = vld [vmem:[#allocation5 + $0x1c0] sm:$0xff]  ;;  %v547_v44 = vld [vmem:[#allocation5 + $0x1c8] sm:$0xff]  ;;  %v1128_v50 = vpack.c.bf16 %v499_v41, %v498_v40 }
  0x40   :  { %902 = vmatmul.mubr.msk.f32.gmra.mrb[2].mxu1 %vm119_vm0, %v50_v57  ;;  %244 = vmatprep.mubr.f32.mxu0 %v1260_v0  ;;  %v1156_v43 = vpack.c.bf16 %v529_v36, %v528_v35  ;;  %v516_v45 = vld [vmem:[#allocation5 + $0xd0] sm:$0xff]  ;;  %v517_v46 = vld [vmem:[#allocation5 + $0xd8] sm:$0xff]  ;;  %v53_v47 = vld [vmem:[%s1542_s0 + $0x20] sm:$0xff]  ;;  %v1158_v51 = vpack.c.bf16 %v547_v44, %v546_v42  ;;  %v99_v35 = vlaneseq }
  0x41   :  { %405 = vmatprep.mubr.f32.mxu1 %v1260_v0  ;;  %1117 = vmatpush3.bf16.msra.mxu0 %v1116_v8  ;;  %v530_v48 = vld [vmem:[#allocation5 + $0x140] sm:$0xff]  ;;  %v531_v49 = vld [vmem:[#allocation5 + $0x148] sm:$0xff]  ;;  %v1130_v52 = vpack.c.bf16 %v517_v46, %v516_v45  ;;  %v500_v53 = vld [vmem:[#allocation5 + $0x50] sm:$0xff] }
  0x42   :  { %1119 = vmatprep.subr.bf16.mxu0 %v1118_v14  ;;  %1149 = vmatpush3.bf16.msra.mxu1 %v1148_v17  ;;  %v501_v54 = vld [vmem:[#allocation5 + $0x58] sm:$0xff]  ;;  %v548_v55 = vld [vmem:[#allocation5 + $0x1d0] sm:$0xff]  ;;  %v1160_v56 = vpack.c.bf16 %v531_v49, %v530_v48  ;;  %v518_v58 = vld [vmem:[#allocation5 + $0xe0] sm:$0xff]  ;;  %v100_v36 = vshrl.u32 %v99_v35, 7 }
  0x43   :  { %887 = vmatmul.mubr.msk.f32.gmra.mrb[4].mxu0 %vm119_vm0, %v51_v12  ;;  %1151 = vmatprep.subr.bf16.mxu1 %v1150_v25  ;;  %v549_v57 = vld [vmem:[#allocation5 + $0x1d8] sm:$0xff]  ;;  %v519_v59 = vld [vmem:[#allocation5 + $0xe8] sm:$0xff]  ;;  %v532_v61 = vld [vmem:[#allocation5 + $0x150] sm:$0xff]  ;;  %v1132_v63 = vpack.c.bf16 %v501_v54, %v500_v53 }
  0x44   :  { %903 = vmatmul.mubr.msk.f32.gmra.mrb[4].mxu1 %vm119_vm0, %v51_v12  ;;  %250 = vmatprep.mubr.f32.mxu0 %v1260_v0  ;;  %v54_v60 = vld [vmem:[%s1542_s0 + $0x28] sm:$0xff]  ;;  %v533_v62 = vld [vmem:[#allocation5 + $0x158] sm:$0xff]  ;;  %v1162_v1 = vpack.c.bf16 %v549_v57, %v548_v55  ;;  %v1134_v2 = vpack.c.bf16 %v519_v59, %v518_v58  ;;  %v502_v3 = vld [vmem:[#allocation5 + $0x60] sm:$0xff]  ;;  %v101_v40 = vsub.s32 0, %v100_v36  ;;  %v113_v41 = vsub.s32 3, %v100_v36 }
  0x45   :  { %411 = vmatprep.mubr.f32.mxu1 %v1260_v0  ;;  %1121 = vmatpush3.bf16.msra.mxu0 %v1120_v24  ;;  %v503_v4 = vld [vmem:[#allocation5 + $0x68] sm:$0xff]  ;;  %v550_v5 = vld [vmem:[#allocation5 + $0x1e0] sm:$0xff]  ;;  %v1164_v6 = vpack.c.bf16 %v533_v62, %v532_v61  ;;  %v520_v8 = vld [vmem:[#allocation5 + $0xf0] sm:$0xff] }
  0x46   :  { %1123 = vmatprep.subr.bf16.mxu0 %v1122_v26  ;;  %1153 = vmatpush3.bf16.msra.mxu1 %v1152_v30  ;;  %v551_v7 = vld [vmem:[#allocation5 + $0x1e8] sm:$0xff]  ;;  %v521_v9 = vld [vmem:[#allocation5 + $0xf8] sm:$0xff]  ;;  %v55_v10 = vld [vmem:[%s1542_s0 + $0x30] sm:$0xff]  ;;  %v1136_v13 = vpack.c.bf16 %v503_v4, %v502_v3 }
  0x47   :  { %888 = vmatmul.mubr.msk.f32.gmra.mrb[6].mxu0 %vm119_vm0, %v52_v34  ;;  %1155 = vmatprep.subr.bf16.mxu1 %v1154_v38  ;;  %v534_v11 = vld [vmem:[#allocation5 + $0x160] sm:$0xff]  ;;  %v535_v12 = vld [vmem:[#allocation5 + $0x168] sm:$0xff]  ;;  %v1166_v14 = vpack.c.bf16 %v551_v7, %v550_v5  ;;  %v1138_v15 = vpack.c.bf16 %v521_v9, %v520_v8  ;;  %v504_v16 = vld [vmem:[#allocation5 + $0x70] sm:$0xff]  ;;  %v105_v38 = vsub.s32 1, %v100_v36 }
  0x48   :  { %904 = vmatmul.mubr.msk.f32.gmra.mrb[6].mxu1 %vm119_vm0, %v52_v34  ;;  %256 = vmatprep.mubr.f32.mxu0 %v1260_v0  ;;  %v505_v17 = vld [vmem:[#allocation5 + $0x78] sm:$0xff]  ;;  %v1168_v18 = vpack.c.bf16 %v535_v12, %v534_v11  ;;  %v552_v19 = vld [vmem:[#allocation5 + $0x1f0] sm:$0xff]  ;;  %v57_v27 = vld [vmem:[%s1542_s0 + $0x40] sm:$0xff] }
  0x49   :  { %417 = vmatprep.mubr.f32.mxu1 %v1260_v0  ;;  %1125 = vmatpush3.bf16.msra.mxu0 %v1124_v37  ;;  %v553_v20 = vld [vmem:[#allocation5 + $0x1f8] sm:$0xff]  ;;  %v536_v22 = vld [vmem:[#allocation5 + $0x170] sm:$0xff]  ;;  %v1140_v24 = vpack.c.bf16 %v505_v17, %v504_v16  ;;  %v58_v28 = vld [vmem:[%s1542_s0 + $0x48] sm:$0xff]  ;;  %v109_v37 = vsub.s32 2, %v100_v36 }
  0x4a   :  { %1127 = vmatprep.subr.bf16.mxu0 %v1126_v39  ;;  %1157 = vmatpush3.bf16.msra.mxu1 %v1156_v43  ;;  %v56_v21 = vld [vmem:[%s1542_s0 + $0x38] sm:$0xff]  ;;  %v1170_v25 = vpack.c.bf16 %v553_v20, %v552_v19  ;;  %v59_v29 = vld [vmem:[%s1542_s0 + $0x50] sm:$0xff]  ;;  %v61_v31 = vld [vmem:[%s1542_s0 + $0x60] sm:$0xff] }
  0x4b   :  { %889 = vmatmul.mubr.msk.f32.gmra.mrb[8].mxu0 %vm119_vm0, %v53_v47  ;;  %1159 = vmatprep.subr.bf16.mxu1 %v1158_v51  ;;  %v537_v23 = vld [vmem:[#allocation5 + $0x178] sm:$0xff]  ;;  %v62_v32 = vld [vmem:[%s1542_s0 + $0x68] sm:$0xff]  ;;  %v63_v33 = vld [vmem:[%s1542_s0 + $0x70] sm:$0xff] }
  0x4c   :  { %905 = vmatmul.mubr.msk.f32.gmra.mrb[8].mxu1 %vm119_vm0, %v53_v47  ;;  %262 = vmatprep.mubr.f32.mxu0 %v1260_v0  ;;  %v1172_v26 = vpack.c.bf16 %v537_v23, %v536_v22  ;;  %v60_v30 = vld [vmem:[%s1542_s0 + $0x58] sm:$0xff]  ;;  %v97_v39 = vld [vmem:[%s1544_s2] sm:$0xf] }
  0x4d   :  { %423 = vmatprep.mubr.f32.mxu1 %v1260_v0  ;;  %1129 = vmatpush3.bf16.msra.mxu0 %v1128_v50  ;;  %v64_v34 = vld [vmem:[%s1542_s0 + $0x78] sm:$0xff]  ;;  %v1434_v42 = vrot.slane %v97_v39, %v109_v37  ;;  %v1436_v43 = vrot.slane %v97_v39, %v105_v38  ;;  %v1438_v44 = vrot.slane %v97_v39, %v101_v40 }
  0x4e   :  { %1131 = vmatprep.subr.bf16.mxu0 %v1130_v52  ;;  %1161 = vmatpush3.bf16.msra.mxu1 %v1160_v56 }
  0x4f   :  { %890 = vmatmul.mubr.msk.f32.gmra.mrb[10].mxu0 %vm119_vm0, %v54_v60  ;;  %1163 = vmatprep.subr.bf16.mxu1 %v1162_v1 }
  0x50   :  { %906 = vmatmul.mubr.msk.f32.gmra.mrb[10].mxu1 %vm119_vm0, %v54_v60  ;;  %268 = vmatprep.mubr.f32.mxu0 %v1260_v0 }
  0x51   :  { %429 = vmatprep.mubr.f32.mxu1 %v1260_v0  ;;  %1133 = vmatpush3.bf16.msra.mxu0 %v1132_v63 }
  0x52   :  { %1135 = vmatprep.subr.bf16.mxu0 %v1134_v2  ;;  %1165 = vmatpush3.bf16.msra.mxu1 %v1164_v6 }
  0x53   :  { %891 = vmatmul.mubr.msk.f32.gmra.mrb[12].mxu0 %vm119_vm0, %v55_v10  ;;  %1167 = vmatprep.subr.bf16.mxu1 %v1166_v14 }
  0x54   :  { %907 = vmatmul.mubr.msk.f32.gmra.mrb[12].mxu1 %vm119_vm0, %v55_v10  ;;  %274 = vmatprep.mubr.f32.mxu0 %v1260_v0 }
  0x55   :  { %435 = vmatprep.mubr.f32.mxu1 %v1260_v0  ;;  %1137 = vmatpush3.bf16.msra.mxu0 %v1136_v13 }
  0x56   :  { %1139 = vmatprep.subr.bf16.mxu0 %v1138_v15  ;;  %1169 = vmatpush3.bf16.msra.mxu1 %v1168_v18 }
  0x57   :  { %892 = vmatmul.mubr.msk.f32.gmra.mrb[14].mxu0 %vm119_vm0, %v56_v21  ;;  %1171 = vmatprep.subr.bf16.mxu1 %v1170_v25 }
  0x58   :  { %908 = vmatmul.mubr.msk.f32.gmra.mrb[14].mxu1 %vm119_vm0, %v56_v21  ;;  %280 = vmatprep.mubr.f32.mxu0 %v1260_v0 }
  0x59   :  { %441 = vmatprep.mubr.f32.mxu1 %v1260_v0  ;;  %1141 = vmatpush3.bf16.msra.mxu0 %v1140_v24 }
  0x5a   :  { %1173 = vmatpush3.bf16.msra.mxu1 %v1172_v26 }
  0x5b   :  { %893 = vmatmul.mubr.msk.f32.gmra.mrb[16].mxu0 %vm119_vm0, %v57_v27 }
  0x5c   :  { %909 = vmatmul.mubr.msk.f32.gmra.mrb[16].mxu1 %vm119_vm0, %v57_v27  ;;  %286 = vmatprep.mubr.f32.mxu0 %v1260_v0 }
  0x5d   :  { %447 = vmatprep.mubr.f32.mxu1 %v1260_v0 }
  0x5f   :  { %894 = vmatmul.mubr.msk.f32.gmra.mrb[18].mxu0 %vm119_vm0, %v58_v28 }
  0x60   :  { %910 = vmatmul.mubr.msk.f32.gmra.mrb[18].mxu1 %vm119_vm0, %v58_v28  ;;  %292 = vmatprep.mubr.f32.mxu0 %v1260_v0 }
  0x61   :  { %453 = vmatprep.mubr.f32.mxu1 %v1260_v0 }
  0x63   :  { %895 = vmatmul.mubr.msk.f32.gmra.mrb[20].mxu0 %vm119_vm0, %v59_v29 }
  0x64   :  { %911 = vmatmul.mubr.msk.f32.gmra.mrb[20].mxu1 %vm119_vm0, %v59_v29  ;;  %298 = vmatprep.mubr.f32.mxu0 %v1260_v0 }
  0x65   :  { %459 = vmatprep.mubr.f32.mxu1 %v1260_v0 }
  0x67   :  { %896 = vmatmul.mubr.msk.f32.gmra.mrb[22].mxu0 %vm119_vm0, %v60_v30 }
  0x68   :  { %912 = vmatmul.mubr.msk.f32.gmra.mrb[22].mxu1 %vm119_vm0, %v60_v30  ;;  %304 = vmatprep.mubr.f32.mxu0 %v1260_v0 }
  0x69   :  { %465 = vmatprep.mubr.f32.mxu1 %v1260_v0 }
  0x6b   :  { %897 = vmatmul.mubr.msk.f32.gmra.mrb[24].mxu0 %vm119_vm0, %v61_v31 }
  0x6c   :  { %913 = vmatmul.mubr.msk.f32.gmra.mrb[24].mxu1 %vm119_vm0, %v61_v31  ;;  %310 = vmatprep.mubr.f32.mxu0 %v1260_v0 }
  0x6d   :  { %471 = vmatprep.mubr.f32.mxu1 %v1260_v0 }
  0x6f   :  { %898 = vmatmul.mubr.msk.f32.gmra.mrb[26].mxu0 %vm119_vm0, %v62_v32 }
  0x70   :  { %914 = vmatmul.mubr.msk.f32.gmra.mrb[26].mxu1 %vm119_vm0, %v62_v32  ;;  %316 = vmatprep.mubr.f32.mxu0 %v1260_v0 }
  0x71   :  { %477 = vmatprep.mubr.f32.mxu1 %v1260_v0 }
  0x73   :  { %899 = vmatmul.mubr.msk.f32.gmra.mrb[28].mxu0 %vm119_vm0, %v63_v33 }
  0x74   :  { %915 = vmatmul.mubr.msk.f32.gmra.mrb[28].mxu1 %vm119_vm0, %v63_v33  ;;  %322 = vmatprep.mubr.f32.mxu0 %v1260_v0 }
  0x75   :  { %483 = vmatprep.mubr.f32.mxu1 %v1260_v0  ;;  %v1440_v0 = vrot.slane %v97_v39, %v113_v41 }
  0x77   :  { %900 = vmatmul.mubr.msk.f32.gmra.mrb[30].mxu0 %vm119_vm0, %v64_v34 }
  0x78   :  { %916 = vmatmul.mubr.msk.f32.gmra.mrb[30].mxu1 %vm119_vm0, %v64_v34 }
 0x10e   :  { %v234_v45 = vpop.f32.mrb[0].mxu0 }
 0x10f   :  { %v395_v46 = vpop.f32.mrb[0].mxu1  ;;  %v236_v47 = vpop.f32.mrb[1].mxu0  ;;  %v235_v51 = vadd.f32 %v234_v45, %v1438_v44 }
 0x110   :  { %v396_v48 = vadd.f32 %v395_v46, %v1434_v42  ;;  %v237_v49 = vadd.f32 %v236_v47, %v1436_v43  ;;  %v397_v50 = vpop.f32.mrb[1].mxu1 }
 0x111   :  { %v398_v52 = vadd.f32 %v397_v50, %v1440_v0 }
 0x112   :  { %v240_v53 = vpop.f32.mrb[2].mxu0  ;;  %625 = vmatprep.mubr.f32.mxu0 %v237_v49 }
 0x113   :  { %v401_v54 = vpop.f32.mrb[2].mxu1  ;;  %770 = vmatprep.mubr.f32.mxu1 %v398_v52  ;;  %v242_v55 = vpop.f32.mrb[3].mxu0  ;;  %626 = vmatmul.mubr.f32.vlgmr.msra.gmra.mrb[32].mxu0 %v235_v51  ;;  %v241_v59 = vadd.f32 %v240_v53, %v1438_v44 }
 0x114   :  { %v402_v56 = vadd.f32 %v401_v54, %v1434_v42  ;;  %v243_v57 = vadd.f32 %v242_v55, %v1436_v43  ;;  %v403_v58 = vpop.f32.mrb[3].mxu1  ;;  %771 = vmatmul.mubr.f32.vlgmr.msra.gmra.mrb[32].mxu1 %v396_v48 }
 0x115   :  { %v404_v60 = vadd.f32 %v403_v58, %v1440_v0 }
 0x116   :  { %v246_v61 = vpop.f32.mrb[4].mxu0  ;;  %630 = vmatprep.mubr.f32.mxu0 %v243_v57 }
 0x117   :  { %v407_v62 = vpop.f32.mrb[4].mxu1  ;;  %775 = vmatprep.mubr.f32.mxu1 %v404_v60  ;;  %v248_v63 = vpop.f32.mrb[5].mxu0  ;;  %631 = vmatmul.mubr.f32.gmra.mrb[34].mxu0 %v241_v59  ;;  %v247_v4 = vadd.f32 %v246_v61, %v1438_v44 }
 0x118   :  { %v408_v1 = vadd.f32 %v407_v62, %v1434_v42  ;;  %v249_v2 = vadd.f32 %v248_v63, %v1436_v43  ;;  %v409_v3 = vpop.f32.mrb[5].mxu1  ;;  %776 = vmatmul.mubr.f32.gmra.mrb[34].mxu1 %v402_v56 }
 0x119   :  { %v410_v5 = vadd.f32 %v409_v3, %v1440_v0 }
 0x11a   :  { %v252_v6 = vpop.f32.mrb[6].mxu0  ;;  %635 = vmatprep.mubr.f32.mxu0 %v249_v2 }
 0x11b   :  { %v413_v7 = vpop.f32.mrb[6].mxu1  ;;  %780 = vmatprep.mubr.f32.mxu1 %v410_v5  ;;  %v254_v8 = vpop.f32.mrb[7].mxu0  ;;  %636 = vmatmul.mubr.f32.gmra.mrb[36].mxu0 %v247_v4  ;;  %v253_v12 = vadd.f32 %v252_v6, %v1438_v44 }
 0x11c   :  { %v414_v9 = vadd.f32 %v413_v7, %v1434_v42  ;;  %v255_v10 = vadd.f32 %v254_v8, %v1436_v43  ;;  %v415_v11 = vpop.f32.mrb[7].mxu1  ;;  %781 = vmatmul.mubr.f32.gmra.mrb[36].mxu1 %v408_v1 }
 0x11d   :  { %v416_v13 = vadd.f32 %v415_v11, %v1440_v0 }
 0x11e   :  { %v258_v14 = vpop.f32.mrb[8].mxu0  ;;  %640 = vmatprep.mubr.f32.mxu0 %v255_v10 }
 0x11f   :  { %v419_v15 = vpop.f32.mrb[8].mxu1  ;;  %785 = vmatprep.mubr.f32.mxu1 %v416_v13  ;;  %v260_v16 = vpop.f32.mrb[9].mxu0  ;;  %641 = vmatmul.mubr.f32.gmra.mrb[38].mxu0 %v253_v12  ;;  %v259_v20 = vadd.f32 %v258_v14, %v1438_v44 }
 0x120   :  { %v420_v17 = vadd.f32 %v419_v15, %v1434_v42  ;;  %v261_v18 = vadd.f32 %v260_v16, %v1436_v43  ;;  %v421_v19 = vpop.f32.mrb[9].mxu1  ;;  %786 = vmatmul.mubr.f32.gmra.mrb[38].mxu1 %v414_v9 }
 0x121   :  { %v422_v21 = vadd.f32 %v421_v19, %v1440_v0 }
 0x122   :  { %v264_v22 = vpop.f32.mrb[10].mxu0  ;;  %645 = vmatprep.mubr.f32.mxu0 %v261_v18 }
 0x123   :  { %v425_v23 = vpop.f32.mrb[10].mxu1  ;;  %790 = vmatprep.mubr.f32.mxu1 %v422_v21  ;;  %v266_v24 = vpop.f32.mrb[11].mxu0  ;;  %646 = vmatmul.mubr.f32.gmra.mrb[40].mxu0 %v259_v20  ;;  %v265_v28 = vadd.f32 %v264_v22, %v1438_v44 }
 0x124   :  { %v426_v25 = vadd.f32 %v425_v23, %v1434_v42  ;;  %v267_v26 = vadd.f32 %v266_v24, %v1436_v43  ;;  %v427_v27 = vpop.f32.mrb[11].mxu1  ;;  %791 = vmatmul.mubr.f32.gmra.mrb[40].mxu1 %v420_v17 }
 0x125   :  { %v428_v29 = vadd.f32 %v427_v27, %v1440_v0 }
 0x126   :  { %v270_v30 = vpop.f32.mrb[12].mxu0  ;;  %650 = vmatprep.mubr.f32.mxu0 %v267_v26 }
 0x127   :  { %v431_v31 = vpop.f32.mrb[12].mxu1  ;;  %795 = vmatprep.mubr.f32.mxu1 %v428_v29  ;;  %v272_v32 = vpop.f32.mrb[13].mxu0  ;;  %651 = vmatmul.mubr.f32.gmra.mrb[42].mxu0 %v265_v28  ;;  %v271_v36 = vadd.f32 %v270_v30, %v1438_v44 }
 0x128   :  { %v432_v33 = vadd.f32 %v431_v31, %v1434_v42  ;;  %v273_v34 = vadd.f32 %v272_v32, %v1436_v43  ;;  %v433_v35 = vpop.f32.mrb[13].mxu1  ;;  %796 = vmatmul.mubr.f32.gmra.mrb[42].mxu1 %v426_v25 }
 0x129   :  { %v434_v37 = vadd.f32 %v433_v35, %v1440_v0 }
 0x12a   :  { %v276_v38 = vpop.f32.mrb[14].mxu0  ;;  %655 = vmatprep.mubr.f32.mxu0 %v273_v34 }
 0x12b   :  { %v437_v39 = vpop.f32.mrb[14].mxu1  ;;  %800 = vmatprep.mubr.f32.mxu1 %v434_v37  ;;  %v278_v40 = vpop.f32.mrb[15].mxu0  ;;  %656 = vmatmul.mubr.f32.gmra.mrb[44].mxu0 %v271_v36  ;;  %v277_v47 = vadd.f32 %v276_v38, %v1438_v44 }
 0x12c   :  { %v438_v41 = vadd.f32 %v437_v39, %v1434_v42  ;;  %v279_v45 = vadd.f32 %v278_v40, %v1436_v43  ;;  %v439_v46 = vpop.f32.mrb[15].mxu1  ;;  %801 = vmatmul.mubr.f32.gmra.mrb[44].mxu1 %v432_v33 }
 0x12d   :  { %v440_v48 = vadd.f32 %v439_v46, %v1440_v0 }
 0x12e   :  { %v282_v49 = vpop.f32.mrb[16].mxu0  ;;  %660 = vmatprep.mubr.f32.mxu0 %v279_v45 }
 0x12f   :  { %v443_v50 = vpop.f32.mrb[16].mxu1  ;;  %805 = vmatprep.mubr.f32.mxu1 %v440_v48  ;;  %v284_v51 = vpop.f32.mrb[17].mxu0  ;;  %661 = vmatmul.mubr.f32.gmra.mrb[46].mxu0 %v277_v47  ;;  %v283_v55 = vadd.f32 %v282_v49, %v1438_v44 }
 0x130   :  { %v444_v52 = vadd.f32 %v443_v50, %v1434_v42  ;;  %v285_v53 = vadd.f32 %v284_v51, %v1436_v43  ;;  %v445_v54 = vpop.f32.mrb[17].mxu1  ;;  %806 = vmatmul.mubr.f32.gmra.mrb[46].mxu1 %v438_v41 }
 0x131   :  { %v446_v56 = vadd.f32 %v445_v54, %v1440_v0 }
 0x132   :  { %v288_v57 = vpop.f32.mrb[18].mxu0  ;;  %665 = vmatprep.mubr.f32.mxu0 %v285_v53 }
 0x133   :  { %v449_v58 = vpop.f32.mrb[18].mxu1  ;;  %810 = vmatprep.mubr.f32.mxu1 %v446_v56  ;;  %v290_v59 = vpop.f32.mrb[19].mxu0  ;;  %666 = vmatmul.mubr.f32.gmra.mrb[48].mxu0 %v283_v55  ;;  %v289_v63 = vadd.f32 %v288_v57, %v1438_v44  ;;  %v1509_v55 = vld [vmem:[%s1546_s4] ss:$0 sm:$0xff]  ;;  %s1261_s4 = smov [#allocation7]  }
 0x134   :  { %v450_v60 = vadd.f32 %v449_v58, %v1434_v42  ;;  %v291_v61 = vadd.f32 %v290_v59, %v1436_v43  ;;  %v451_v62 = vpop.f32.mrb[19].mxu1  ;;  %811 = vmatmul.mubr.f32.gmra.mrb[48].mxu1 %v444_v52  ;;  %s872_s28 = sshll.u32 %s1261_s4, 4  ;;  %s873_s28 = int_to_ptr.vmem [resolvable:$true] %s872_s28 }
 0x135   :  { %v452_v1 = vadd.f32 %v451_v62, %v1440_v0  ;;  %s1226_s29 = scalar_lea.vmem %s873_s28, 2048  ;;  %p1231_p3 = scmp.lt.s32.totalorder %s873_s28, %s873_s28 }
 0x136   :  { %v294_v2 = vpop.f32.mrb[20].mxu0  ;;  %670 = vmatprep.mubr.f32.mxu0 %v291_v61  ;;  %p1227_p2 = scmp.ne.s32.totalorder %s873_s28, %s1226_s29  ;;  %p1232_p4 = scmp.lt.s32.totalorder %s1226_s29, %s1226_s29 }
 0x137   :  { %v455_v3 = vpop.f32.mrb[20].mxu1  ;;  %815 = vmatprep.mubr.f32.mxu1 %v452_v1  ;;  %v296_v4 = vpop.f32.mrb[21].mxu0  ;;  %671 = vmatmul.mubr.f32.gmra.mrb[50].mxu0 %v289_v63  ;;  %v295_v8 = vadd.f32 %v294_v2, %v1438_v44 }
 0x138   :  { %v456_v5 = vadd.f32 %v455_v3, %v1434_v42  ;;  %v297_v6 = vadd.f32 %v296_v4, %v1436_v43  ;;  %v457_v7 = vpop.f32.mrb[21].mxu1  ;;  %816 = vmatmul.mubr.f32.gmra.mrb[50].mxu1 %v450_v60  ;;  %p1233_p5 = por %p1232_p4, %p1231_p3 }
 0x139   :  { %v458_v9 = vadd.f32 %v457_v7, %v1440_v0 }
 0x13a   :  { %v300_v10 = vpop.f32.mrb[22].mxu0  ;;  %675 = vmatprep.mubr.f32.mxu0 %v297_v6  ;;  %p1234_p6 = pnand %p1233_p5, %p1227_p2 }
 0x13b   :  { %v461_v11 = vpop.f32.mrb[22].mxu1  ;;  %820 = vmatprep.mubr.f32.mxu1 %v458_v9  ;;  %v302_v12 = vpop.f32.mrb[23].mxu0  ;;  %676 = vmatmul.mubr.f32.gmra.mrb[52].mxu0 %v295_v8  ;;  %v301_v16 = vadd.f32 %v300_v10, %v1438_v44 }
 0x13c   :  { %v462_v13 = vadd.f32 %v461_v11, %v1434_v42  ;;  %v303_v14 = vadd.f32 %v302_v12, %v1436_v43  ;;  %v463_v15 = vpop.f32.mrb[23].mxu1  ;;  %821 = vmatmul.mubr.f32.gmra.mrb[52].mxu1 %v456_v5 }
 0x13d   :  { %v464_v17 = vadd.f32 %v463_v15, %v1440_v0 }
 0x13e   :  { %v306_v18 = vpop.f32.mrb[24].mxu0  ;;  %680 = vmatprep.mubr.f32.mxu0 %v303_v14 }
 0x13f   :  { %v467_v19 = vpop.f32.mrb[24].mxu1  ;;  %825 = vmatprep.mubr.f32.mxu1 %v464_v17  ;;  %v308_v20 = vpop.f32.mrb[25].mxu0  ;;  %681 = vmatmul.mubr.f32.gmra.mrb[54].mxu0 %v301_v16  ;;  %v307_v24 = vadd.f32 %v306_v18, %v1438_v44 }
 0x140   :  { %v468_v21 = vadd.f32 %v467_v19, %v1434_v42  ;;  %v309_v22 = vadd.f32 %v308_v20, %v1436_v43  ;;  %v469_v23 = vpop.f32.mrb[25].mxu1  ;;  %826 = vmatmul.mubr.f32.gmra.mrb[54].mxu1 %v462_v13 }
 0x141   :  { %v470_v25 = vadd.f32 %v469_v23, %v1440_v0 }
 0x142   :  { %v312_v26 = vpop.f32.mrb[26].mxu0  ;;  %685 = vmatprep.mubr.f32.mxu0 %v309_v22 }
 0x143   :  { %v473_v27 = vpop.f32.mrb[26].mxu1  ;;  %830 = vmatprep.mubr.f32.mxu1 %v470_v25  ;;  %v314_v28 = vpop.f32.mrb[27].mxu0  ;;  %686 = vmatmul.mubr.f32.gmra.mrb[56].mxu0 %v307_v24  ;;  %v313_v32 = vadd.f32 %v312_v26, %v1438_v44 }
 0x144   :  { %v474_v29 = vadd.f32 %v473_v27, %v1434_v42  ;;  %v315_v30 = vadd.f32 %v314_v28, %v1436_v43  ;;  %v475_v31 = vpop.f32.mrb[27].mxu1  ;;  %831 = vmatmul.mubr.f32.gmra.mrb[56].mxu1 %v468_v21 }
 0x145   :  { %v476_v33 = vadd.f32 %v475_v31, %v1440_v0 }
 0x146   :  { %v318_v34 = vpop.f32.mrb[28].mxu0  ;;  %690 = vmatprep.mubr.f32.mxu0 %v315_v30 }
 0x147   :  { %v479_v35 = vpop.f32.mrb[28].mxu1  ;;  %835 = vmatprep.mubr.f32.mxu1 %v476_v33  ;;  %v320_v36 = vpop.f32.mrb[29].mxu0  ;;  %691 = vmatmul.mubr.f32.gmra.mrb[58].mxu0 %v313_v32  ;;  %v319_v40 = vadd.f32 %v318_v34, %v1438_v44 }
 0x148   :  { %v480_v37 = vadd.f32 %v479_v35, %v1434_v42  ;;  %v321_v38 = vadd.f32 %v320_v36, %v1436_v43  ;;  %v481_v39 = vpop.f32.mrb[29].mxu1  ;;  %836 = vmatmul.mubr.f32.gmra.mrb[58].mxu1 %v474_v29 }
 0x149   :  { %v482_v41 = vadd.f32 %v481_v39, %v1440_v0 }
 0x14a   :  { %v324_v45 = vpop.f32.mrb[30].mxu0  ;;  %695 = vmatprep.mubr.f32.mxu0 %v321_v38 }
 0x14b   :  { %v485_v46 = vpop.f32.mrb[30].mxu1  ;;  %840 = vmatprep.mubr.f32.mxu1 %v482_v41  ;;  %v326_v47 = vpop.f32.mrb[31].mxu0  ;;  %696 = vmatmul.mubr.f32.gmra.mrb[60].mxu0 %v319_v40  ;;  %v325_v51 = vadd.f32 %v324_v45, %v1438_v44 }
 0x14c   :  { %v486_v48 = vadd.f32 %v485_v46, %v1434_v42  ;;  %v327_v49 = vadd.f32 %v326_v47, %v1436_v43  ;;  %v487_v50 = vpop.f32.mrb[31].mxu1  ;;  %841 = vmatmul.mubr.f32.gmra.mrb[60].mxu1 %v480_v37 }
 0x14d   :  { %v488_v52 = vadd.f32 %v487_v50, %v1440_v0 }
 0x14e   :  { %700 = vmatprep.mubr.f32.mxu0 %v327_v49 }
 0x14f   :  { %845 = vmatprep.mubr.f32.mxu1 %v488_v52  ;;  %701 = vmatmul.mubr.f32.gmra.mrb[62].mxu0 %v325_v51 }
 0x150   :  { %846 = vmatmul.mubr.f32.gmra.mrb[62].mxu1 %v486_v48 }
 0x1e6   :  { %v950_v53 = vpop.f32.mrb[32].mxu0 }
 0x1e7   :  { %v1030_v54 = vpop.f32.mrb[32].mxu1  ;;  %v951_v42 = vpop.f32.mrb[33].mxu0 }
 0x1e8   :  { %v952_v56 = vadd.f32 %v951_v42, %v950_v53  ;;  %v1031_v43 = vpop.f32.mrb[33].mxu1 }
 0x1e9   :  { %v1032_v57 = vadd.f32 %v1031_v43, %v1030_v54 }
 0x1ea   :  { %v628_v58 = vadd.f32 %v952_v56, %v1509_v55  ;;  %v953_v44 = vpop.f32.mrb[34].mxu0 }
 0x1eb   :  { %v1033_v59 = vpop.f32.mrb[34].mxu1  ;;  %v954_v0 = vpop.f32.mrb[35].mxu0 }
 0x1ec   :  { %v773_v60 = vadd.f32 %v1032_v57, %v628_v58  ;;  %v955_v61 = vadd.f32 %v954_v0, %v953_v44  ;;  %v1034_v62 = vpop.f32.mrb[35].mxu1 }
 0x1ed   :  { %v1035_v63 = vadd.f32 %v1034_v62, %v1033_v59 }
 0x1ee   :  { %851 = vst [vmem:[#allocation7] sm:$0xff] %v773_v60  ;;  %v633_v1 = vadd.f32 %v955_v61, %v1509_v55  ;;  %v956_v2 = vpop.f32.mrb[36].mxu0 }
 0x1ef   :  { %v1036_v3 = vpop.f32.mrb[36].mxu1  ;;  %v957_v4 = vpop.f32.mrb[37].mxu0 }
 0x1f0   :  { %v778_v5 = vadd.f32 %v1035_v63, %v633_v1  ;;  %v958_v6 = vadd.f32 %v957_v4, %v956_v2  ;;  %v1037_v7 = vpop.f32.mrb[37].mxu1 }
 0x1f1   :  { %v1038_v8 = vadd.f32 %v1037_v7, %v1036_v3 }
 0x1f2   :  { %852 = vst [vmem:[#allocation7 + $0x8] sm:$0xff] %v778_v5  ;;  %v638_v9 = vadd.f32 %v958_v6, %v1509_v55  ;;  %v959_v10 = vpop.f32.mrb[38].mxu0 }
 0x1f3   :  { %v1039_v11 = vpop.f32.mrb[38].mxu1  ;;  %v960_v12 = vpop.f32.mrb[39].mxu0 }
 0x1f4   :  { %v783_v13 = vadd.f32 %v1038_v8, %v638_v9  ;;  %v961_v14 = vadd.f32 %v960_v12, %v959_v10  ;;  %v1040_v15 = vpop.f32.mrb[39].mxu1 }
 0x1f5   :  { %v1041_v16 = vadd.f32 %v1040_v15, %v1039_v11 }
 0x1f6   :  { %853 = vst [vmem:[#allocation7 + $0x10] sm:$0xff] %v783_v13  ;;  %v643_v17 = vadd.f32 %v961_v14, %v1509_v55  ;;  %v962_v18 = vpop.f32.mrb[40].mxu0 }
 0x1f7   :  { %v1042_v19 = vpop.f32.mrb[40].mxu1  ;;  %v963_v20 = vpop.f32.mrb[41].mxu0 }
 0x1f8   :  { %v788_v21 = vadd.f32 %v1041_v16, %v643_v17  ;;  %v964_v22 = vadd.f32 %v963_v20, %v962_v18  ;;  %v1043_v23 = vpop.f32.mrb[41].mxu1 }
 0x1f9   :  { %v1044_v24 = vadd.f32 %v1043_v23, %v1042_v19 }
 0x1fa   :  { %854 = vst [vmem:[#allocation7 + $0x18] sm:$0xff] %v788_v21  ;;  %v648_v25 = vadd.f32 %v964_v22, %v1509_v55  ;;  %v965_v26 = vpop.f32.mrb[42].mxu0 }
 0x1fb   :  { %v1045_v27 = vpop.f32.mrb[42].mxu1  ;;  %v966_v28 = vpop.f32.mrb[43].mxu0 }
 0x1fc   :  { %v793_v29 = vadd.f32 %v1044_v24, %v648_v25  ;;  %v967_v30 = vadd.f32 %v966_v28, %v965_v26  ;;  %v1046_v31 = vpop.f32.mrb[43].mxu1 }
 0x1fd   :  { %v1047_v32 = vadd.f32 %v1046_v31, %v1045_v27 }
 0x1fe   :  { %855 = vst [vmem:[#allocation7 + $0x20] sm:$0xff] %v793_v29  ;;  %v653_v33 = vadd.f32 %v967_v30, %v1509_v55  ;;  %v968_v34 = vpop.f32.mrb[44].mxu0 }
 0x1ff   :  { %v1048_v35 = vpop.f32.mrb[44].mxu1  ;;  %v969_v36 = vpop.f32.mrb[45].mxu0 }
 0x200   :  { %v798_v37 = vadd.f32 %v1047_v32, %v653_v33  ;;  %v970_v38 = vadd.f32 %v969_v36, %v968_v34  ;;  %v1049_v39 = vpop.f32.mrb[45].mxu1 }
 0x201   :  { %v1050_v40 = vadd.f32 %v1049_v39, %v1048_v35 }
 0x202   :  { %856 = vst [vmem:[#allocation7 + $0x28] sm:$0xff] %v798_v37  ;;  %v658_v41 = vadd.f32 %v970_v38, %v1509_v55  ;;  %v971_v45 = vpop.f32.mrb[46].mxu0 }
 0x203   :  { %v1051_v46 = vpop.f32.mrb[46].mxu1  ;;  %v972_v47 = vpop.f32.mrb[47].mxu0 }
 0x204   :  { %v803_v48 = vadd.f32 %v1050_v40, %v658_v41  ;;  %v973_v49 = vadd.f32 %v972_v47, %v971_v45  ;;  %v1052_v50 = vpop.f32.mrb[47].mxu1 }
 0x205   :  { %v1053_v51 = vadd.f32 %v1052_v50, %v1051_v46 }
 0x206   :  { %857 = vst [vmem:[#allocation7 + $0x30] sm:$0xff] %v803_v48  ;;  %v663_v52 = vadd.f32 %v973_v49, %v1509_v55  ;;  %v974_v53 = vpop.f32.mrb[48].mxu0 }
 0x207   :  { %v1054_v54 = vpop.f32.mrb[48].mxu1  ;;  %v975_v42 = vpop.f32.mrb[49].mxu0 }
 0x208   :  { %v808_v56 = vadd.f32 %v1053_v51, %v663_v52  ;;  %v976_v43 = vadd.f32 %v975_v42, %v974_v53  ;;  %v1055_v57 = vpop.f32.mrb[49].mxu1 }
 0x209   :  { %v1056_v58 = vadd.f32 %v1055_v57, %v1054_v54 }
 0x20a   :  { %858 = vst [vmem:[#allocation7 + $0x38] sm:$0xff] %v808_v56  ;;  %v668_v44 = vadd.f32 %v976_v43, %v1509_v55  ;;  %v977_v59 = vpop.f32.mrb[50].mxu0 }
 0x20b   :  { %v1057_v0 = vpop.f32.mrb[50].mxu1  ;;  %v978_v60 = vpop.f32.mrb[51].mxu0 }
 0x20c   :  { %v813_v61 = vadd.f32 %v1056_v58, %v668_v44  ;;  %v979_v62 = vadd.f32 %v978_v60, %v977_v59  ;;  %v1058_v63 = vpop.f32.mrb[51].mxu1 }
 0x20d   :  { %v1059_v1 = vadd.f32 %v1058_v63, %v1057_v0 }
 0x20e   :  { %859 = vst [vmem:[#allocation7 + $0x40] sm:$0xff] %v813_v61  ;;  %v673_v2 = vadd.f32 %v979_v62, %v1509_v55  ;;  %v980_v3 = vpop.f32.mrb[52].mxu0 }
 0x20f   :  { %v1060_v4 = vpop.f32.mrb[52].mxu1  ;;  %v981_v5 = vpop.f32.mrb[53].mxu0 }
 0x210   :  { %v818_v6 = vadd.f32 %v1059_v1, %v673_v2  ;;  %v982_v7 = vadd.f32 %v981_v5, %v980_v3  ;;  %v1061_v8 = vpop.f32.mrb[53].mxu1 }
 0x211   :  { %v1062_v9 = vadd.f32 %v1061_v8, %v1060_v4 }
 0x212   :  { %860 = vst [vmem:[#allocation7 + $0x48] sm:$0xff] %v818_v6  ;;  %v678_v10 = vadd.f32 %v982_v7, %v1509_v55  ;;  %v983_v11 = vpop.f32.mrb[54].mxu0 }
 0x213   :  { %v1063_v12 = vpop.f32.mrb[54].mxu1  ;;  %v984_v13 = vpop.f32.mrb[55].mxu0 }
 0x214   :  { %v823_v14 = vadd.f32 %v1062_v9, %v678_v10  ;;  %v985_v15 = vadd.f32 %v984_v13, %v983_v11  ;;  %v1064_v16 = vpop.f32.mrb[55].mxu1 }
 0x215   :  { %v1065_v17 = vadd.f32 %v1064_v16, %v1063_v12 }
 0x216   :  { %861 = vst [vmem:[#allocation7 + $0x50] sm:$0xff] %v823_v14  ;;  %v683_v18 = vadd.f32 %v985_v15, %v1509_v55  ;;  %v986_v19 = vpop.f32.mrb[56].mxu0 }
 0x217   :  { %v1066_v20 = vpop.f32.mrb[56].mxu1  ;;  %v987_v21 = vpop.f32.mrb[57].mxu0 }
 0x218   :  { %v828_v22 = vadd.f32 %v1065_v17, %v683_v18  ;;  %v988_v23 = vadd.f32 %v987_v21, %v986_v19  ;;  %v1067_v24 = vpop.f32.mrb[57].mxu1 }
 0x219   :  { %v1068_v25 = vadd.f32 %v1067_v24, %v1066_v20 }
 0x21a   :  { %862 = vst [vmem:[#allocation7 + $0x58] sm:$0xff] %v828_v22  ;;  %v688_v26 = vadd.f32 %v988_v23, %v1509_v55  ;;  %v989_v27 = vpop.f32.mrb[58].mxu0 }
 0x21b   :  { %v1069_v28 = vpop.f32.mrb[58].mxu1  ;;  %v990_v29 = vpop.f32.mrb[59].mxu0 }
 0x21c   :  { %v833_v30 = vadd.f32 %v1068_v25, %v688_v26  ;;  %v991_v31 = vadd.f32 %v990_v29, %v989_v27  ;;  %v1070_v32 = vpop.f32.mrb[59].mxu1 }
 0x21d   :  { %v1071_v33 = vadd.f32 %v1070_v32, %v1069_v28 }
 0x21e   :  { %863 = vst [vmem:[#allocation7 + $0x60] sm:$0xff] %v833_v30  ;;  %v693_v34 = vadd.f32 %v991_v31, %v1509_v55  ;;  %v992_v35 = vpop.f32.mrb[60].mxu0 }
 0x21f   :  { %v1072_v36 = vpop.f32.mrb[60].mxu1  ;;  %v993_v37 = vpop.f32.mrb[61].mxu0 }
 0x220   :  { %v838_v38 = vadd.f32 %v1071_v33, %v693_v34  ;;  %v994_v39 = vadd.f32 %v993_v37, %v992_v35  ;;  %v1073_v40 = vpop.f32.mrb[61].mxu1 }
 0x221   :  { %v1074_v41 = vadd.f32 %v1073_v40, %v1072_v36 }
 0x222   :  { %864 = vst [vmem:[#allocation7 + $0x68] sm:$0xff] %v838_v38  ;;  %v698_v45 = vadd.f32 %v994_v39, %v1509_v55  ;;  %v995_v46 = vpop.f32.mrb[62].mxu0 }
 0x223   :  { %v1075_v47 = vpop.f32.mrb[62].mxu1  ;;  %v996_v48 = vpop.f32.mrb[63].mxu0 }
 0x224   :  { %v843_v49 = vadd.f32 %v1074_v41, %v698_v45  ;;  %v997_v50 = vadd.f32 %v996_v48, %v995_v46  ;;  %v1076_v51 = vpop.f32.mrb[63].mxu1 }
 0x225   :  { %v1077_v52 = vadd.f32 %v1076_v51, %v1075_v47 }
 0x226   :  { %865 = vst [vmem:[#allocation7 + $0x70] sm:$0xff] %v843_v49  ;;  %v703_v53 = vadd.f32 %v997_v50, %v1509_v55 }
 0x228   :  { %v848_v54 = vadd.f32 %v1077_v52, %v703_v53 }
 0x22a   :  { %866 = vst [vmem:[#allocation7 + $0x78] sm:$0xff] %v848_v54 }
 0x22b   :  { %1237 = shalt.err (!%p1234_p6)
}
 0x22c   :  { %s1238_s7 = scalar_lea.hbm %s1547_s5, 2048 }
 0x22d   :  { %p1239_p7 = scmp.ne.s32.totalorder %s1547_s5, %s1238_s7  ;;  %p1242_p8 = scmp.lt.u32.totalorder %s1238_s7, %s1547_s5 }
 0x22f   :  { %p1244_p9 = pnand %p1242_p8, %p1239_p7 }
 0x231   :  { %1247 = shalt.err (!%p1244_p9)
}
 0x232   :  { %878 = dma.vmem_to_hbm [thread:$0]  %s873_s28, 2048, %s1547_s5, [#allocation4], %s1258_s1, %s1258_s1, %s1259_s17  }
 0x233   :  { %1252 = dma.done.wait [#allocation4], 2048  }
 0x234   :  { %1253 = vsyncadd [#allocation4], 4294965248 }
 0x235   :  { %882 = vsyncpa [#allocation3], 1 }
 0x236   :  { %883 = vsyncpa [#allocation6], 1 }
 0x237   :  { %884 = vsyncpa [#allocation4], 1 }

</bundles_post_ra>
